<compile_context>
chip_gen: v7x
topology: tpu7x:2x2x1
jax: 0.10.0
libtpu: 0.0.40
codegen_flags: <defaults>
</compile_context>

<pallas_src>
import functools
import math

import jax
import jax.numpy as jnp
from jax import lax
from jax.experimental import pallas as pl
from jax.experimental.pallas import tpu as pltpu

LN_EPS = 1e-5
NEG_BIG = -1e30  # finite, avoids NaN hazard if a row were ever fully masked


def _layernorm(x, w, b):
    mu = jnp.mean(x, axis=-1, keepdims=True)
    d = x - mu
    var = jnp.mean(d * d, axis=-1, keepdims=True)
    return d * lax.rsqrt(var + LN_EPS) * w + b


def _gelu_tanh(x):
    # TODO(synk): torch nn.GELU() default is the exact erf form; tanh
    # approximation used because erf is not guaranteed to lower in Mosaic.
    c = math.sqrt(2.0 / math.pi)
    return 0.5 * x * (1.0 + jnp.tanh(c * (x + 0.044715 * x * x * x)))


def transformer_block_kernel(
        x_ref,
        ln1w_ref, ln1b_ref,
        wqkv_ref, wproj_ref, bproj_ref,
        ln2w_ref, ln2b_ref,
        wfc_ref, bfc_ref, wpr_ref, bpr_ref,
        o_ref,
        *, n_head, kv_heads, head_dim):
    """One batch element per grid step.

    x_ref:  (1, T, C)
    wqkv:   (C, C + 2*kv_heads*head_dim) bf16  -- wq pre-scaled by 1/sqrt(hd)
    wproj:  (C, C) bf16, bproj (1, C) f32
    wfc:    (C, 4C) bf16, bfc (1, 4C) f32
    wpr:    (4C, C) bf16, bpr (1, C) f32
    o_ref:  (1, T, C)
    """
    T, C = x_ref.shape[1], x_ref.shape[2]
    gqa_sz = n_head // kv_heads
    kvd = kv_heads * head_dim
    bf16 = jnp.bfloat16

    x = x_ref[0]  # (T, C) f32

    # ---- ln_1 + fused q/k/v projection (single lane-dense MXU matmul) ----
    h1 = _layernorm(x, ln1w_ref[...], ln1b_ref[...]).astype(bf16)
    qkv = jnp.dot(h1, wqkv_ref[...],
                  preferred_element_type=jnp.float32)                   # (T, C + 2*kvd)
    q = qkv[:, :C].astype(bf16)
    k = qkv[:, C:C + kvd].astype(bf16)
    v = qkv[:, C + kvd:].astype(bf16)

    # Causal additive bias, replicated along sublanes for the stacked group rows.
    row = lax.broadcasted_iota(jnp.int32, (T, T), 0)
    col = lax.broadcasted_iota(jnp.int32, (T, T), 1)
    bias = jnp.where(row >= col, 0.0, NEG_BIG).astype(jnp.float32)
    bias_stack = jnp.concatenate([bias] * gqa_sz, axis=0)               # (gqa_sz*T, T)

    wproj = wproj_ref[...]                                              # (C, C) bf16
    attn = jnp.zeros((T, C), jnp.float32)

    # One fused score / P@V matmul per kv head (gqa_sz query heads stacked on rows).
    for kh in range(kv_heads):
        q_stack = jnp.concatenate(
            [q[:, h * head_dim:(h + 1) * head_dim]
             for h in range(kh * gqa_sz, (kh + 1) * gqa_sz)], axis=0)   # (gqa_sz*T, hd)
        k_h = k[:, kh * head_dim:(kh + 1) * head_dim]                   # (T, hd)
        v_h = v[:, kh * head_dim:(kh + 1) * head_dim]                   # (T, hd)

        # NT matmul: contract last dims of both (no explicit transpose of k_h).
        s = lax.dot_general(q_stack, k_h, (((1,), (1,)), ((), ())),
                            preferred_element_type=jnp.float32)         # (gqa_sz*T, T)
        s = s + bias_stack
        m = jnp.max(s, axis=-1, keepdims=True)
        p = jnp.exp(s - m)
        l = jnp.sum(p, axis=-1, keepdims=True)
        y = jnp.dot(p.astype(bf16), v_h,
                    preferred_element_type=jnp.float32)                 # (gqa_sz*T, hd)
        y = y * pl.reciprocal(l, approx=True)

        # Accumulate the output projection per head: no lane-axis concat.
        for g in range(gqa_sz):
            h = kh * gqa_sz + g
            y_h = y[g * T:(g + 1) * T, :].astype(bf16)                  # (T, hd)
            attn = attn + jnp.dot(
                y_h, wproj[h * head_dim:(h + 1) * head_dim, :],
                preferred_element_type=jnp.float32)

    x1 = x + attn + bproj_ref[...]                                      # residual 1

    # ---- ln_2 + MLP ----
    h2 = _layernorm(x1, ln2w_ref[...], ln2b_ref[...]).astype(bf16)
    fc = jnp.dot(h2, wfc_ref[...], preferred_element_type=jnp.float32) + bfc_ref[...]
    gact = _gelu_tanh(fc).astype(bf16)
    mlp = jnp.dot(gact, wpr_ref[...], preferred_element_type=jnp.float32) + bpr_ref[...]

    # TODO(synk): at C=64 the output store is a masked (64-lane) vst; a
    # lane-dense (T//2, 2C)=(8,128) refold would need an in-kernel shape_cast
    # across the lane boundary, which is not guaranteed to lower in Mosaic.
    o_ref[0] = (x1 + mlp).astype(o_ref.dtype)


def transformer_block(x, p, *, n_head, kv_heads):
    B, T, C = x.shape
    head_dim = C // n_head
    bf16 = jnp.bfloat16

    # Host-side: fold attention scale into wq; concat q/kv weights into one
    # lane-dense matmul operand; cast matmul weights to bf16.
    wq = (p["wq"] / math.sqrt(head_dim)).astype(bf16)
    wqkv = jnp.concatenate([wq, p["wkv"].astype(bf16)], axis=1)  # (C, C + 2*kvd)
    wproj = p["wproj"].astype(bf16)
    wfc = p["wfc"].astype(bf16)
    wpr = p["wpr"].astype(bf16)
    qkv_out = wqkv.shape[1]
    H = wfc.shape[1]

    kernel = functools.partial(
        transformer_block_kernel,
        n_head=n_head, kv_heads=kv_heads, head_dim=head_dim)

    def full(shape):
        return pl.BlockSpec(shape, lambda b: (0,) * len(shape))

    # TODO(synk): if scaled to production C/T, add K-tiling over C for the
    # weight BlockSpecs and flash-style tiling over T (v7x has only 64 MiB VMEM).
    return pl.pallas_call(
        kernel,
        out_shape=jax.ShapeDtypeStruct((B, T, C), x.dtype),
        grid=(B,),
        in_specs=[
            pl.BlockSpec((1, T, C), lambda b: (b, 0, 0)),
            full((1, C)), full((1, C)),          # ln_1 w, b
            full((C, qkv_out)),                  # wqkv (scaled wq | wkv)
            full((C, C)), full((1, C)),          # wproj, bproj
            full((1, C)), full((1, C)),          # ln_2 w, b
            full((C, H)), full((1, H)),          # c_fc  w, b
            full((H, C)), full((1, C)),          # mlp c_proj w, b
        ],
        out_specs=pl.BlockSpec((1, T, C), lambda b: (b, 0, 0)),
        compiler_params=pltpu.CompilerParams(
            dimension_semantics=("parallel",)),
    )(x, p["ln1w"], p["ln1b"], wqkv, wproj, p["bproj"],
      p["ln2w"], p["ln2b"], wfc, p["bfc"], wpr, p["bpr"])


def reference_forward(x, p, *, n_head, kv_heads):
    """Pure-JAX f32 reference mirroring the PyTorch TransformerBlock."""
    B, T, C = x.shape
    hd = C // n_head
    gqa = n_head // kv_heads

    def ln(z, w, b):
        mu = z.mean(-1, keepdims=True)
        var = ((z - mu) ** 2).mean(-1, keepdims=True)
        return (z - mu) / jnp.sqrt(var + LN_EPS) * w + b

    h1 = ln(x, p["ln1w"], p["ln1b"])
    q = (h1 @ p["wq"]).reshape(B, T, n_head, hd).transpose(0, 2, 1, 3)
    kv = h1 @ p["wkv"]
    k, v = jnp.split(kv, 2, axis=-1)
    k = k.reshape(B, T, kv_heads, hd).transpose(0, 2, 1, 3)
    v = v.reshape(B, T, kv_heads, hd).transpose(0, 2, 1, 3)
    k = jnp.repeat(k, gqa, axis=1)       # enable_gqa=True == repeat_interleave
    v = jnp.repeat(v, gqa, axis=1)
    s = jnp.einsum("bhqd,bhkd->bhqk", q, k) / math.sqrt(hd)
    mask = jnp.tril(jnp.ones((T, T), dtype=bool))
    s = jnp.where(mask, s, -jnp.inf)
    a = jax.nn.softmax(s, axis=-1)
    o = jnp.einsum("bhqk,bhkd->bhqd", a, v)
    o = o.transpose(0, 2, 1, 3).reshape(B, T, C)
    x1 = x + o @ p["wproj"] + p["bproj"]
    h2 = ln(x1, p["ln2w"], p["ln2b"])
    m = _gelu_tanh(h2 @ p["wfc"] + p["bfc"]) @ p["wpr"] + p["bpr"]
    return x1 + m


if __name__ == "__main__":
    # Config: n_embd=64, n_head=4, kv_heads=2 -> head_dim=16, gqa_sz=2
    B, T, C = 2, 16, 64
    n_head, kv_heads = 4, 2
    gqa_sz = n_head // kv_heads
    kv_out = 2 * C // gqa_sz     # kv_attn out_features = 64
    H = 4 * C

    key = jax.random.PRNGKey(0)
    ks = jax.random.split(key, 12)
    f32 = jnp.float32
    x = jax.random.normal(ks[0], (B, T, C), dtype=f32)
    params = dict(
        ln1w=1.0 + 0.1 * jax.random.normal(ks[1], (1, C), dtype=f32),
        ln1b=0.1 * jax.random.normal(ks[2], (1, C), dtype=f32),
        wq=0.02 * jax.random.normal(ks[3], (C, C), dtype=f32),
        wkv=0.02 * jax.random.normal(ks[4], (C, kv_out), dtype=f32),
        wproj=0.02 * jax.random.normal(ks[5], (C, C), dtype=f32),
        bproj=0.02 * jax.random.normal(ks[6], (1, C), dtype=f32),
        ln2w=1.0 + 0.1 * jax.random.normal(ks[7], (1, C), dtype=f32),
        ln2b=0.1 * jax.random.normal(ks[8], (1, C), dtype=f32),
        wfc=0.02 * jax.random.normal(ks[9], (C, H), dtype=f32),
        bfc=0.02 * jax.random.normal(ks[10], (1, H), dtype=f32),
        wpr=0.02 * jax.random.normal(ks[11], (H, C), dtype=f32),
        bpr=jnp.zeros((1, C), dtype=f32),
    )

    out = transformer_block(x, params, n_head=n_head, kv_heads=kv_heads)
    out = jax.block_until_ready(out)

    ref = reference_forward(x, params, n_head=n_head, kv_heads=kv_heads)
    err = float(jnp.max(jnp.abs(out - ref)))
    assert out.shape == (B, T, C)
    # bf16 matmul operands + approx reciprocal -> loosened tolerance vs f32 ref
    assert jnp.allclose(out, ref, atol=2e-2, rtol=2e-2), f"max abs err {err}"
    print("KERNEL_OK")
</pallas_src>

<mosaic_0001>
module attributes {stable_mosaic.version = 11 : i64} {
  func.func @transformer_block_kernel(%arg0: i32, %arg1: memref<1x16x64xf32, #tpu.memory_space<vmem>>, %arg2: memref<1x64xf32, #tpu.memory_space<vmem>>, %arg3: memref<1x64xf32, #tpu.memory_space<vmem>>, %arg4: memref<64x128xbf16, #tpu.memory_space<vmem>>, %arg5: memref<64x64xbf16, #tpu.memory_space<vmem>>, %arg6: memref<1x64xf32, #tpu.memory_space<vmem>>, %arg7: memref<1x64xf32, #tpu.memory_space<vmem>>, %arg8: memref<1x64xf32, #tpu.memory_space<vmem>>, %arg9: memref<64x256xbf16, #tpu.memory_space<vmem>>, %arg10: memref<1x256xf32, #tpu.memory_space<vmem>>, %arg11: memref<256x64xbf16, #tpu.memory_space<vmem>>, %arg12: memref<1x64xf32, #tpu.memory_space<vmem>>, %arg13: memref<1x16x64xf32, #tpu.memory_space<vmem>>) attributes {dimension_semantics = [#tpu.dimension_semantics<parallel>], iteration_bounds = array<i64: 2>, scalar_prefetch = 0 : i64, scratch_operands = 0 : i64, tpu.core_type = #tpu.core_type<tc>, window_params = [{transform_indices = @transform_0, window_bounds = array<i64: 1, 16, 64>}, {pipeline_mode = #tpu.pipeline_mode<synchronous>, transform_indices = @transform_1, window_bounds = array<i64: 1, 64>}, {pipeline_mode = #tpu.pipeline_mode<synchronous>, transform_indices = @transform_2, window_bounds = array<i64: 1, 64>}, {pipeline_mode = #tpu.pipeline_mode<synchronous>, transform_indices = @transform_3, window_bounds = array<i64: 64, 128>}, {pipeline_mode = #tpu.pipeline_mode<synchronous>, transform_indices = @transform_4, window_bounds = array<i64: 64, 64>}, {pipeline_mode = #tpu.pipeline_mode<synchronous>, transform_indices = @transform_5, window_bounds = array<i64: 1, 64>}, {pipeline_mode = #tpu.pipeline_mode<synchronous>, transform_indices = @transform_6, window_bounds = array<i64: 1, 64>}, {pipeline_mode = #tpu.pipeline_mode<synchronous>, transform_indices = @transform_7, window_bounds = array<i64: 1, 64>}, {pipeline_mode = #tpu.pipeline_mode<synchronous>, transform_indices = @transform_8, window_bounds = array<i64: 64, 256>}, {pipeline_mode = #tpu.pipeline_mode<synchronous>, transform_indices = @transform_9, window_bounds = array<i64: 1, 256>}, {pipeline_mode = #tpu.pipeline_mode<synchronous>, transform_indices = @transform_10, window_bounds = array<i64: 256, 64>}, {pipeline_mode = #tpu.pipeline_mode<synchronous>, transform_indices = @transform_11, window_bounds = array<i64: 1, 64>}, {transform_indices = @transform_12, window_bounds = array<i64: 1, 16, 64>}]} {
    %c0 = arith.constant 0 : index
    %c0_0 = arith.constant 0 : index
    %c0_1 = arith.constant 0 : index
    %0 = vector.load %arg1[%c0, %c0_0, %c0_1] : memref<1x16x64xf32, #tpu.memory_space<vmem>>, vector<1x16x64xf32>
    %1 = vector.shape_cast %0 : vector<1x16x64xf32> to vector<16x64xf32>
    %c0_2 = arith.constant 0 : index
    %c0_3 = arith.constant 0 : index
    %2 = vector.load %arg2[%c0_2, %c0_3] : memref<1x64xf32, #tpu.memory_space<vmem>>, vector<1x64xf32>
    %c0_4 = arith.constant 0 : index
    %c0_5 = arith.constant 0 : index
    %3 = vector.load %arg3[%c0_4, %c0_5] : memref<1x64xf32, #tpu.memory_space<vmem>>, vector<1x64xf32>
    %cst = arith.constant dense<0.000000e+00> : vector<16xf32>
    %4 = vector.multi_reduction <add>, %1, %cst [1] : vector<16x64xf32> to vector<16xf32>
    %5 = vector.shape_cast %4 : vector<16xf32> to vector<16x1xf32>
    %cst_6 = arith.constant 6.400000e+01 : f32
    %6 = vector.broadcast %cst_6 : f32 to vector<16x1xf32>
    %7 = arith.divf %5, %6 : vector<16x1xf32>
    %8 = vector.broadcast %7 : vector<16x1xf32> to vector<16x64xf32>
    %9 = arith.subf %1, %8 : vector<16x64xf32>
    %10 = arith.mulf %9, %9 : vector<16x64xf32>
    %cst_7 = arith.constant dense<0.000000e+00> : vector<16xf32>
    %11 = vector.multi_reduction <add>, %10, %cst_7 [1] : vector<16x64xf32> to vector<16xf32>
    %12 = vector.shape_cast %11 : vector<16xf32> to vector<16x1xf32>
    %cst_8 = arith.constant 6.400000e+01 : f32
    %13 = vector.broadcast %cst_8 : f32 to vector<16x1xf32>
    %14 = arith.divf %12, %13 : vector<16x1xf32>
    %cst_9 = arith.constant 9.99999974E-6 : f32
    %15 = vector.broadcast %cst_9 : f32 to vector<16x1xf32>
    %16 = arith.addf %14, %15 : vector<16x1xf32>
    %17 = math.rsqrt %16 : vector<16x1xf32>
    %18 = vector.broadcast %17 : vector<16x1xf32> to vector<16x64xf32>
    %19 = arith.mulf %9, %18 : vector<16x64xf32>
    %20 = vector.broadcast %2 : vector<1x64xf32> to vector<16x64xf32>
    %21 = arith.mulf %19, %20 : vector<16x64xf32>
    %22 = vector.broadcast %3 : vector<1x64xf32> to vector<16x64xf32>
    %23 = arith.addf %21, %22 : vector<16x64xf32>
    %24 = arith.truncf %23 : vector<16x64xf32> to vector<16x64xbf16>
    %c0_10 = arith.constant 0 : index
    %c0_11 = arith.constant 0 : index
    %25 = vector.load %arg4[%c0_10, %c0_11] : memref<64x128xbf16, #tpu.memory_space<vmem>>, vector<64x128xbf16>
    %cst_12 = arith.constant dense<0.000000e+00> : vector<16x128xf32>
    %26 = tpu.matmul %24, %25, %cst_12 {dimension_numbers = #tpu.dot_dimension_numbers<[1], [0], [0], [1], [0, 0, 1, 1], [], []>} : vector<16x64xbf16>, vector<64x128xbf16>, vector<16x128xf32> -> vector<16x128xf32>
    %27 = vector.extract_strided_slice %26 {offsets = [0, 0], sizes = [16, 64], strides = [1, 1]} : vector<16x128xf32> to vector<16x64xf32>
    %28 = arith.truncf %27 : vector<16x64xf32> to vector<16x64xbf16>
    %29 = vector.extract_strided_slice %26 {offsets = [0, 64], sizes = [16, 32], strides = [1, 1]} : vector<16x128xf32> to vector<16x32xf32>
    %30 = arith.truncf %29 : vector<16x32xf32> to vector<16x32xbf16>
    %31 = vector.extract_strided_slice %26 {offsets = [0, 96], sizes = [16, 32], strides = [1, 1]} : vector<16x128xf32> to vector<16x32xf32>
    %32 = arith.truncf %31 : vector<16x32xf32> to vector<16x32xbf16>
    %33 = tpu.iota {dimensions = array<i32: 0>} : vector<16x16xi32>
    %34 = tpu.iota {dimensions = array<i32: 1>} : vector<16x16xi32>
    %35 = arith.cmpi sge, %33, %34 : vector<16x16xi32>
    %cst_13 = arith.constant 0.000000e+00 : f32
    %cst_14 = arith.constant -1.000000e+30 : f32
    %36 = vector.broadcast %cst_13 : f32 to vector<16x16xf32>
    %37 = vector.broadcast %cst_14 : f32 to vector<16x16xf32>
    %38 = arith.select %35, %36, %37 : vector<16x16xi1>, vector<16x16xf32>
    %39 = tpu.concatenate %38, %38 in 0 : vector<16x16xf32>, vector<16x16xf32> -> vector<32x16xf32>
    %c0_15 = arith.constant 0 : index
    %c0_16 = arith.constant 0 : index
    %40 = vector.load %arg5[%c0_15, %c0_16] : memref<64x64xbf16, #tpu.memory_space<vmem>>, vector<64x64xbf16>
    %cst_17 = arith.constant 0.000000e+00 : f32
    %41 = vector.broadcast %cst_17 : f32 to vector<16x64xf32>
    %42 = vector.extract_strided_slice %28 {offsets = [0, 0], sizes = [16, 16], strides = [1, 1]} : vector<16x64xbf16> to vector<16x16xbf16>
    %43 = vector.extract_strided_slice %28 {offsets = [0, 16], sizes = [16, 16], strides = [1, 1]} : vector<16x64xbf16> to vector<16x16xbf16>
    %44 = tpu.concatenate %42, %43 in 0 : vector<16x16xbf16>, vector<16x16xbf16> -> vector<32x16xbf16>
    %45 = vector.extract_strided_slice %30 {offsets = [0, 0], sizes = [16, 16], strides = [1, 1]} : vector<16x32xbf16> to vector<16x16xbf16>
    %46 = vector.extract_strided_slice %32 {offsets = [0, 0], sizes = [16, 16], strides = [1, 1]} : vector<16x32xbf16> to vector<16x16xbf16>
    %cst_18 = arith.constant dense<0.000000e+00> : vector<32x16xf32>
    %47 = tpu.matmul %44, %45, %cst_18 {dimension_numbers = #tpu.dot_dimension_numbers<[1], [1], [0], [0], [0, 0, 1, 0], [], []>} : vector<32x16xbf16>, vector<16x16xbf16>, vector<32x16xf32> -> vector<32x16xf32>
    %48 = arith.addf %47, %39 : vector<32x16xf32>
    %cst_19 = arith.constant dense<0xFF800000> : vector<32xf32>
    %49 = vector.multi_reduction <maximumf>, %48, %cst_19 [1] : vector<32x16xf32> to vector<32xf32>
    %50 = vector.shape_cast %49 : vector<32xf32> to vector<32x1xf32>
    %51 = vector.broadcast %50 : vector<32x1xf32> to vector<32x16xf32>
    %52 = arith.subf %48, %51 : vector<32x16xf32>
    %53 = math.exp %52 : vector<32x16xf32>
    %cst_20 = arith.constant dense<0.000000e+00> : vector<32xf32>
    %54 = vector.multi_reduction <add>, %53, %cst_20 [1] : vector<32x16xf32> to vector<32xf32>
    %55 = vector.shape_cast %54 : vector<32xf32> to vector<32x1xf32>
    %56 = arith.truncf %53 : vector<32x16xf32> to vector<32x16xbf16>
    %cst_21 = arith.constant dense<0.000000e+00> : vector<32x16xf32>
    %57 = tpu.matmul %56, %46, %cst_21 {dimension_numbers = #tpu.dot_dimension_numbers<[1], [0], [0], [1], [0, 0, 1, 1], [], []>} : vector<32x16xbf16>, vector<16x16xbf16>, vector<32x16xf32> -> vector<32x16xf32>
    %58 = tpu.reciprocal %55 {approx = true} : vector<32x1xf32> -> vector<32x1xf32>
    %59 = vector.broadcast %58 : vector<32x1xf32> to vector<32x16xf32>
    %60 = arith.mulf %57, %59 : vector<32x16xf32>
    %61 = vector.extract_strided_slice %60 {offsets = [0, 0], sizes = [16, 16], strides = [1, 1]} : vector<32x16xf32> to vector<16x16xf32>
    %62 = arith.truncf %61 : vector<16x16xf32> to vector<16x16xbf16>
    %63 = vector.extract_strided_slice %40 {offsets = [0, 0], sizes = [16, 64], strides = [1, 1]} : vector<64x64xbf16> to vector<16x64xbf16>
    %cst_22 = arith.constant dense<0.000000e+00> : vector<16x64xf32>
    %64 = tpu.matmul %62, %63, %cst_22 {dimension_numbers = #tpu.dot_dimension_numbers<[1], [0], [0], [1], [0, 0, 1, 1], [], []>} : vector<16x16xbf16>, vector<16x64xbf16>, vector<16x64xf32> -> vector<16x64xf32>
    %65 = arith.addf %41, %64 : vector<16x64xf32>
    %66 = vector.extract_strided_slice %60 {offsets = [16, 0], sizes = [16, 16], strides = [1, 1]} : vector<32x16xf32> to vector<16x16xf32>
    %67 = arith.truncf %66 : vector<16x16xf32> to vector<16x16xbf16>
    %68 = vector.extract_strided_slice %40 {offsets = [16, 0], sizes = [16, 64], strides = [1, 1]} : vector<64x64xbf16> to vector<16x64xbf16>
    %cst_23 = arith.constant dense<0.000000e+00> : vector<16x64xf32>
    %69 = tpu.matmul %67, %68, %cst_23 {dimension_numbers = #tpu.dot_dimension_numbers<[1], [0], [0], [1], [0, 0, 1, 1], [], []>} : vector<16x16xbf16>, vector<16x64xbf16>, vector<16x64xf32> -> vector<16x64xf32>
    %70 = arith.addf %65, %69 : vector<16x64xf32>
    %71 = vector.extract_strided_slice %28 {offsets = [0, 32], sizes = [16, 16], strides = [1, 1]} : vector<16x64xbf16> to vector<16x16xbf16>
    %72 = vector.extract_strided_slice %28 {offsets = [0, 48], sizes = [16, 16], strides = [1, 1]} : vector<16x64xbf16> to vector<16x16xbf16>
    %73 = tpu.concatenate %71, %72 in 0 : vector<16x16xbf16>, vector<16x16xbf16> -> vector<32x16xbf16>
    %74 = vector.extract_strided_slice %30 {offsets = [0, 16], sizes = [16, 16], strides = [1, 1]} : vector<16x32xbf16> to vector<16x16xbf16>
    %75 = vector.extract_strided_slice %32 {offsets = [0, 16], sizes = [16, 16], strides = [1, 1]} : vector<16x32xbf16> to vector<16x16xbf16>
    %cst_24 = arith.constant dense<0.000000e+00> : vector<32x16xf32>
    %76 = tpu.matmul %73, %74, %cst_24 {dimension_numbers = #tpu.dot_dimension_numbers<[1], [1], [0], [0], [0, 0, 1, 0], [], []>} : vector<32x16xbf16>, vector<16x16xbf16>, vector<32x16xf32> -> vector<32x16xf32>
    %77 = arith.addf %76, %39 : vector<32x16xf32>
    %cst_25 = arith.constant dense<0xFF800000> : vector<32xf32>
    %78 = vector.multi_reduction <maximumf>, %77, %cst_25 [1] : vector<32x16xf32> to vector<32xf32>
    %79 = vector.shape_cast %78 : vector<32xf32> to vector<32x1xf32>
    %80 = vector.broadcast %79 : vector<32x1xf32> to vector<32x16xf32>
    %81 = arith.subf %77, %80 : vector<32x16xf32>
    %82 = math.exp %81 : vector<32x16xf32>
    %cst_26 = arith.constant dense<0.000000e+00> : vector<32xf32>
    %83 = vector.multi_reduction <add>, %82, %cst_26 [1] : vector<32x16xf32> to vector<32xf32>
    %84 = vector.shape_cast %83 : vector<32xf32> to vector<32x1xf32>
    %85 = arith.truncf %82 : vector<32x16xf32> to vector<32x16xbf16>
    %cst_27 = arith.constant dense<0.000000e+00> : vector<32x16xf32>
    %86 = tpu.matmul %85, %75, %cst_27 {dimension_numbers = #tpu.dot_dimension_numbers<[1], [0], [0], [1], [0, 0, 1, 1], [], []>} : vector<32x16xbf16>, vector<16x16xbf16>, vector<32x16xf32> -> vector<32x16xf32>
    %87 = tpu.reciprocal %84 {approx = true} : vector<32x1xf32> -> vector<32x1xf32>
    %88 = vector.broadcast %87 : vector<32x1xf32> to vector<32x16xf32>
    %89 = arith.mulf %86, %88 : vector<32x16xf32>
    %90 = vector.extract_strided_slice %89 {offsets = [0, 0], sizes = [16, 16], strides = [1, 1]} : vector<32x16xf32> to vector<16x16xf32>
    %91 = arith.truncf %90 : vector<16x16xf32> to vector<16x16xbf16>
    %92 = vector.extract_strided_slice %40 {offsets = [32, 0], sizes = [16, 64], strides = [1, 1]} : vector<64x64xbf16> to vector<16x64xbf16>
    %cst_28 = arith.constant dense<0.000000e+00> : vector<16x64xf32>
    %93 = tpu.matmul %91, %92, %cst_28 {dimension_numbers = #tpu.dot_dimension_numbers<[1], [0], [0], [1], [0, 0, 1, 1], [], []>} : vector<16x16xbf16>, vector<16x64xbf16>, vector<16x64xf32> -> vector<16x64xf32>
    %94 = arith.addf %70, %93 : vector<16x64xf32>
    %95 = vector.extract_strided_slice %89 {offsets = [16, 0], sizes = [16, 16], strides = [1, 1]} : vector<32x16xf32> to vector<16x16xf32>
    %96 = arith.truncf %95 : vector<16x16xf32> to vector<16x16xbf16>
    %97 = vector.extract_strided_slice %40 {offsets = [48, 0], sizes = [16, 64], strides = [1, 1]} : vector<64x64xbf16> to vector<16x64xbf16>
    %cst_29 = arith.constant dense<0.000000e+00> : vector<16x64xf32>
    %98 = tpu.matmul %96, %97, %cst_29 {dimension_numbers = #tpu.dot_dimension_numbers<[1], [0], [0], [1], [0, 0, 1, 1], [], []>} : vector<16x16xbf16>, vector<16x64xbf16>, vector<16x64xf32> -> vector<16x64xf32>
    %99 = arith.addf %94, %98 : vector<16x64xf32>
    %100 = arith.addf %1, %99 : vector<16x64xf32>
    %c0_30 = arith.constant 0 : index
    %c0_31 = arith.constant 0 : index
    %101 = vector.load %arg6[%c0_30, %c0_31] : memref<1x64xf32, #tpu.memory_space<vmem>>, vector<1x64xf32>
    %102 = vector.broadcast %101 : vector<1x64xf32> to vector<16x64xf32>
    %103 = arith.addf %100, %102 : vector<16x64xf32>
    %c0_32 = arith.constant 0 : index
    %c0_33 = arith.constant 0 : index
    %104 = vector.load %arg7[%c0_32, %c0_33] : memref<1x64xf32, #tpu.memory_space<vmem>>, vector<1x64xf32>
    %c0_34 = arith.constant 0 : index
    %c0_35 = arith.constant 0 : index
    %105 = vector.load %arg8[%c0_34, %c0_35] : memref<1x64xf32, #tpu.memory_space<vmem>>, vector<1x64xf32>
    %cst_36 = arith.constant dense<0.000000e+00> : vector<16xf32>
    %106 = vector.multi_reduction <add>, %103, %cst_36 [1] : vector<16x64xf32> to vector<16xf32>
    %107 = vector.shape_cast %106 : vector<16xf32> to vector<16x1xf32>
    %cst_37 = arith.constant 6.400000e+01 : f32
    %108 = vector.broadcast %cst_37 : f32 to vector<16x1xf32>
    %109 = arith.divf %107, %108 : vector<16x1xf32>
    %110 = vector.broadcast %109 : vector<16x1xf32> to vector<16x64xf32>
    %111 = arith.subf %103, %110 : vector<16x64xf32>
    %112 = arith.mulf %111, %111 : vector<16x64xf32>
    %cst_38 = arith.constant dense<0.000000e+00> : vector<16xf32>
    %113 = vector.multi_reduction <add>, %112, %cst_38 [1] : vector<16x64xf32> to vector<16xf32>
    %114 = vector.shape_cast %113 : vector<16xf32> to vector<16x1xf32>
    %cst_39 = arith.constant 6.400000e+01 : f32
    %115 = vector.broadcast %cst_39 : f32 to vector<16x1xf32>
    %116 = arith.divf %114, %115 : vector<16x1xf32>
    %cst_40 = arith.constant 9.99999974E-6 : f32
    %117 = vector.broadcast %cst_40 : f32 to vector<16x1xf32>
    %118 = arith.addf %116, %117 : vector<16x1xf32>
    %119 = math.rsqrt %118 : vector<16x1xf32>
    %120 = vector.broadcast %119 : vector<16x1xf32> to vector<16x64xf32>
    %121 = arith.mulf %111, %120 : vector<16x64xf32>
    %122 = vector.broadcast %104 : vector<1x64xf32> to vector<16x64xf32>
    %123 = arith.mulf %121, %122 : vector<16x64xf32>
    %124 = vector.broadcast %105 : vector<1x64xf32> to vector<16x64xf32>
    %125 = arith.addf %123, %124 : vector<16x64xf32>
    %126 = arith.truncf %125 : vector<16x64xf32> to vector<16x64xbf16>
    %c0_41 = arith.constant 0 : index
    %c0_42 = arith.constant 0 : index
    %127 = vector.load %arg9[%c0_41, %c0_42] : memref<64x256xbf16, #tpu.memory_space<vmem>>, vector<64x256xbf16>
    %cst_43 = arith.constant dense<0.000000e+00> : vector<16x256xf32>
    %128 = tpu.matmul %126, %127, %cst_43 {dimension_numbers = #tpu.dot_dimension_numbers<[1], [0], [0], [1], [0, 0, 1, 1], [], []>} : vector<16x64xbf16>, vector<64x256xbf16>, vector<16x256xf32> -> vector<16x256xf32>
    %c0_44 = arith.constant 0 : index
    %c0_45 = arith.constant 0 : index
    %129 = vector.load %arg10[%c0_44, %c0_45] : memref<1x256xf32, #tpu.memory_space<vmem>>, vector<1x256xf32>
    %130 = vector.broadcast %129 : vector<1x256xf32> to vector<16x256xf32>
    %131 = arith.addf %128, %130 : vector<16x256xf32>
    %cst_46 = arith.constant 5.000000e-01 : f32
    %132 = vector.broadcast %cst_46 : f32 to vector<16x256xf32>
    %133 = arith.mulf %132, %131 : vector<16x256xf32>
    %cst_47 = arith.constant 4.471500e-02 : f32
    %134 = vector.broadcast %cst_47 : f32 to vector<16x256xf32>
    %135 = arith.mulf %134, %131 : vector<16x256xf32>
    %136 = arith.mulf %135, %131 : vector<16x256xf32>
    %137 = arith.mulf %136, %131 : vector<16x256xf32>
    %138 = arith.addf %131, %137 : vector<16x256xf32>
    %cst_48 = arith.constant 0.797884583 : f32
    %139 = vector.broadcast %cst_48 : f32 to vector<16x256xf32>
    %140 = arith.mulf %139, %138 : vector<16x256xf32>
    %141 = math.tanh %140 : vector<16x256xf32>
    %cst_49 = arith.constant 1.000000e+00 : f32
    %142 = vector.broadcast %cst_49 : f32 to vector<16x256xf32>
    %143 = arith.addf %142, %141 : vector<16x256xf32>
    %144 = arith.mulf %133, %143 : vector<16x256xf32>
    %145 = arith.truncf %144 : vector<16x256xf32> to vector<16x256xbf16>
    %c0_50 = arith.constant 0 : index
    %c0_51 = arith.constant 0 : index
    %146 = vector.load %arg11[%c0_50, %c0_51] : memref<256x64xbf16, #tpu.memory_space<vmem>>, vector<256x64xbf16>
    %cst_52 = arith.constant dense<0.000000e+00> : vector<16x64xf32>
    %147 = tpu.matmul %145, %146, %cst_52 {dimension_numbers = #tpu.dot_dimension_numbers<[1], [0], [0], [1], [0, 0, 1, 1], [], []>} : vector<16x256xbf16>, vector<256x64xbf16>, vector<16x64xf32> -> vector<16x64xf32>
    %c0_53 = arith.constant 0 : index
    %c0_54 = arith.constant 0 : index
    %148 = vector.load %arg12[%c0_53, %c0_54] : memref<1x64xf32, #tpu.memory_space<vmem>>, vector<1x64xf32>
    %149 = vector.broadcast %148 : vector<1x64xf32> to vector<16x64xf32>
    %150 = arith.addf %147, %149 : vector<16x64xf32>
    %151 = arith.addf %103, %150 : vector<16x64xf32>
    %c0_55 = arith.constant 0 : index
    %c0_56 = arith.constant 0 : index
    %c0_57 = arith.constant 0 : index
    %152 = vector.load %arg13[%c0_55, %c0_56, %c0_57] : memref<1x16x64xf32, #tpu.memory_space<vmem>>, vector<1x16x64xf32>
    %153 = vector.shape_cast %152 : vector<1x16x64xf32> to vector<16x64xf32>
    %154 = vector.shape_cast %151 : vector<16x64xf32> to vector<1x16x64xf32>
    tpu.vector_store %arg13[%c0_55, %c0_56, %c0_57], %154 {strides = array<i32>} : memref<1x16x64xf32, #tpu.memory_space<vmem>>, vector<1x16x64xf32>,
    return
  }
  func.func @transform_0(%arg0: i32) -> (i32, i32, i32) {
    %c0_i32 = arith.constant 0 : i32
    %c0_i32_0 = arith.constant 0 : i32
    %c0_i32_1 = arith.constant 0 : i32
    return %arg0, %c0_i32, %c0_i32_0 : i32, i32, i32
  }
  func.func @transform_1(%arg0: i32) -> (i32, i32) {
    %c0_i32 = arith.constant 0 : i32
    %c0_i32_0 = arith.constant 0 : i32
    %c0_i32_1 = arith.constant 0 : i32
    return %c0_i32, %c0_i32_0 : i32, i32
  }
  func.func @transform_2(%arg0: i32) -> (i32, i32) {
    %c0_i32 = arith.constant 0 : i32
    %c0_i32_0 = arith.constant 0 : i32
    %c0_i32_1 = arith.constant 0 : i32
    return %c0_i32, %c0_i32_0 : i32, i32
  }
  func.func @transform_3(%arg0: i32) -> (i32, i32) {
    %c0_i32 = arith.constant 0 : i32
    %c0_i32_0 = arith.constant 0 : i32
    %c0_i32_1 = arith.constant 0 : i32
    return %c0_i32, %c0_i32_0 : i32, i32
  }
  func.func @transform_4(%arg0: i32) -> (i32, i32) {
    %c0_i32 = arith.constant 0 : i32
    %c0_i32_0 = arith.constant 0 : i32
    %c0_i32_1 = arith.constant 0 : i32
    return %c0_i32, %c0_i32_0 : i32, i32
  }
  func.func @transform_5(%arg0: i32) -> (i32, i32) {
    %c0_i32 = arith.constant 0 : i32
    %c0_i32_0 = arith.constant 0 : i32
    %c0_i32_1 = arith.constant 0 : i32
    return %c0_i32, %c0_i32_0 : i32, i32
  }
  func.func @transform_6(%arg0: i32) -> (i32, i32) {
    %c0_i32 = arith.constant 0 : i32
    %c0_i32_0 = arith.constant 0 : i32
    %c0_i32_1 = arith.constant 0 : i32
    return %c0_i32, %c0_i32_0 : i32, i32
  }
  func.func @transform_7(%arg0: i32) -> (i32, i32) {
    %c0_i32 = arith.constant 0 : i32
    %c0_i32_0 = arith.constant 0 : i32
    %c0_i32_1 = arith.constant 0 : i32
    return %c0_i32, %c0_i32_0 : i32, i32
  }
  func.func @transform_8(%arg0: i32) -> (i32, i32) {
    %c0_i32 = arith.constant 0 : i32
    %c0_i32_0 = arith.constant 0 : i32
    %c0_i32_1 = arith.constant 0 : i32
    return %c0_i32, %c0_i32_0 : i32, i32
  }
  func.func @transform_9(%arg0: i32) -> (i32, i32) {
    %c0_i32 = arith.constant 0 : i32
    %c0_i32_0 = arith.constant 0 : i32
    %c0_i32_1 = arith.constant 0 : i32
    return %c0_i32, %c0_i32_0 : i32, i32
  }
  func.func @transform_10(%arg0: i32) -> (i32, i32) {
    %c0_i32 = arith.constant 0 : i32
    %c0_i32_0 = arith.constant 0 : i32
    %c0_i32_1 = arith.constant 0 : i32
    return %c0_i32, %c0_i32_0 : i32, i32
  }
  func.func @transform_11(%arg0: i32) -> (i32, i32) {
    %c0_i32 = arith.constant 0 : i32
    %c0_i32_0 = arith.constant 0 : i32
    %c0_i32_1 = arith.constant 0 : i32
    return %c0_i32, %c0_i32_0 : i32, i32
  }
  func.func @transform_12(%arg0: i32) -> (i32, i32, i32) {
    %c0_i32 = arith.constant 0 : i32
    %c0_i32_0 = arith.constant 0 : i32
    %c0_i32_1 = arith.constant 0 : i32
    return %arg0, %c0_i32, %c0_i32_0 : i32, i32, i32
  }
}

</mosaic_0001>

<bundles_post_ra>
// kernel: tpu_custom_call.1
= control target key start
LH: loop header
LB: loop body
LE: loop exit
PB: predicated region body
PF: predicated region fallthrough
CT: control target
= control target key end

     0   :  { %s2349_s0 = inlined_call_operand.vmem [shape: f32[2,16,64], index: 0, kind: input, shape index: {}]   ;;  %s2350_s1 = inlined_call_operand.vmem [shape: f32[1,64], index: 1, kind: input, shape index: {}]   ;;  %s2351_s2 = inlined_call_operand.vmem [shape: f32[1,64], index: 2, kind: input, shape index: {}]   ;;  %s2352_s3 = inlined_call_operand.vmem [shape: bf16[64,128], index: 3, kind: input, shape index: {}]   ;;  %s2353_s4 = inlined_call_operand.vmem [shape: bf16[64,64], index: 4, kind: input, shape index: {}]   ;;  %s2354_s5 = inlined_call_operand.vmem [shape: f32[1,64], index: 5, kind: input, shape index: {}]   ;;  %s2355_s6 = inlined_call_operand.vmem [shape: f32[1,64], index: 6, kind: input, shape index: {}]   ;;  %s2356_s7 = inlined_call_operand.vmem [shape: f32[1,64], index: 7, kind: input, shape index: {}]   ;;  %s2357_s8 = inlined_call_operand.vmem [shape: bf16[64,256], index: 8, kind: input, shape index: {}]   ;;  %s2358_s9 = inlined_call_operand.vmem [shape: f32[1,256], index: 9, kind: input, shape index: {}]   ;;  %s2359_s10 = inlined_call_operand.vmem [shape: bf16[256,64], index: 10, kind: input, shape index: {}]   ;;  %s2360_s11 = inlined_call_operand.vmem [shape: f32[1,64], index: 11, kind: input, shape index: {}]   ;;  %s2361_s12 = inlined_call_operand.hbm [shape: f32[2,16,64], index: 12, kind: output, shape index: {}]  }
   0x1   :  { %2362 = sst [smem:[#allocation5_spill]] %s2349_s0 }
   0x2   :  { %17 = vsyncpa [#allocation3], 0 }
   0x3   :  { %19 = vsyncpa [#allocation3 + $0x1], 0  ;;  %s2008_s21 = smov 0   ;;  %s2010_s22 = smov 0  }
   0x4   :  { %s2012_s23 = smov 0   ;;  %s2014_s24 = smov 0  }
   0x5 LB: > { %s2029_s25 = sadd.s32 4294967295, %s1928_s24   ;;  %s1556_s26 = sadd.s32 4294967294, %s1928_s24   ;;  %s1928_s24 = sphi %s2014_s24, %s2369_s24   ;;  %s1924_s23 = sphi %s2012_s23, %s2368_s23   ;;  %s1920_s22 = sphi %s2010_s22, %s2367_s22   ;;  %s1916_s21 = sphi %s2008_s21, %s2366_s21  }
   0x6   : > { %s2033_s27 = sadd.s32 1, %s1928_s24   ;;  %s289_s28 = sadd.s32 1, %s1924_s23 }
   0x7   : > { %s286_s29 = ssub.s32 %s1928_s24, %s2033_s27  ;;  %p299_p0 = scmp.ne.s32.totalorder %s1924_s23, %s1920_s22 }
   0x8   : > { %p287_p1 = scmp.eq.s32.totalorder %s286_s29, 0  ;;  %p300_p2 = scmp.eq.s32.totalorder %s2029_s25, 1 }
   0x9   : > { %p305_p3 = scmp.ne.s32.totalorder %s1920_s22, %s1916_s21  ;;  %p306_p4 = scmp.eq.s32.totalorder %s1556_s26, 1 }
   0xa   : > { %s2044_s30 = scalar_select %p287_p1, %s1924_s23, %s289_s28  }
   0xb   : > { %p2046_p5 = por %p300_p2, %p299_p0  ;;  %p2050_p6 = por %p306_p4, %p305_p3 }
   0xc   : > { %p1559_p7 = scmp.ge.s32.totalorder %s1928_s24, 1  ;;  %p365_p8 = scmp.lt.s32.totalorder %s1928_s24, 3 }
   0xe   : > { %p366_p9 = pnand %p1559_p7, %p365_p8 }
   0xf   : > { %p407_p10 = scmp.lt.s32.totalorder (!%p366_p9), %s2029_s25, 1  ;;  %vm417_vm0 = vcmask (!%p366_p9), 523264   ;;  %s2365_s0 = sld [smem:[#allocation5_spill]] (!%p366_p9)  ;;  %v1782_v14 = vld [vmem:[%s2352_s3] sm:$0xff] (!%p366_p9)   ;;  %v1930_v15 = vmov (!%p366_p9), 0.0   ;;  %v1783_v16 = vld [vmem:[%s2352_s3 + $0x8] sm:$0xff] (!%p366_p9)   ;;  %v539_v44 = vlaneseq (!%p366_p9) }
  0x10   : > { %369 = sbr.rel (%p366_p9) target bundleno = 2913 (0xb61), region = 68  ;;  %1669 = vmatprep.subr.bf16.mxu0 (!%p366_p9), %v1930_v15  ;;  %v1784_v17 = vld [vmem:[%s2352_s3 + $0x10] sm:$0xff] (!%p366_p9)   ;;  %v1785_v18 = vld [vmem:[%s2352_s3 + $0x18] sm:$0xff] (!%p366_p9)   ;;  %vm1931_vm1 = vmmov (!%p366_p9), 0   ;;  %v1563_v27 = vld [vmem:[%s2350_s1] ss:$0 sm:$0xff] (!%p366_p9) }
  0x11   : > { %1670 = vmatpush3.bf16.msra.mxu0 (!%p366_p9), %v1782_v14  ;;  %1677 = vmatprep.mubr.msk.bf16.mxu0 (!%p366_p9), %vm1931_vm1, %v1930_v15  ;;  %v1564_v31 = vld [vmem:[%s2351_s2] ss:$0 sm:$0xff] (!%p366_p9)  ;;  %vm561_vm2 = vcmask (!%p366_p9), 130048   ;;  %s1932_s29 = smov (!%p366_p9), 112   ;;  %v2113_v45 = vshrl.u32 (!%p366_p9), %v539_v44, 7  ;;  %v543_v46 = vand.u32 (!%p366_p9), 127, %v539_v44 }
  0x12   : > { %1671 = vmatprep.subr.bf16.mxu0 (!%p366_p9), %v1930_v15  ;;  %v1934_v48 = vmov (!%p366_p9), -1e+30   ;;  %s1936_s17 = smov (!%p366_p9), 96   ;;  %s1937_s20 = smov (!%p366_p9), 48  }
  0x13   : > { %v541_v47 = vadd.s32 (!%p366_p9), 8, %v2113_v45  ;;  %vm544_vm3 = vcmp.ge.s32.totalorder (!%p366_p9), %v2113_v45, %v543_v46 }
  0x14   : > { %v2117_v49 = vsel (!%p366_p9), %vm544_vm3, 0.0, %v1934_v48 }
  0x15   : > { %1672 = vmatpush3.bf16.msra.mxu0 (!%p366_p9), %v1783_v16  ;;  %vm545_vm4 = vcmp.ge.s32.totalorder (!%p366_p9), %v541_v47, %v543_v46 }
  0x16   : > { %1673 = vmatprep.subr.bf16.mxu0 (!%p366_p9), %v1930_v15  ;;  %v2120_v53 = vsel (!%p366_p9), %vm545_vm4, 0.0, %v1934_v48 }
  0x17   : > { %s408_s15 = scalar_select %p407_p10, %s2029_s25, 1 }
  0x19   : > { %s1620_s16 = sshll.u32 %s408_s15, 4  ;;  %1674 = vmatpush3.bf16.msra.mxu0 %v1784_v17  ;;  %s1933_s15 = smov 64  }
  0x1a   : > { %s411_s19 = scalar_lea.vmem %s2365_s0, %s1620_s16  ;;  %1675 = vmatprep.subr.bf16.mxu0 %v1930_v15  ;;  %s1935_s16 = smov 32  }
  0x1b   : > { %v2061_v0 = vld [vmem:[%s411_s19] sm:$0xff]  ;;  %v2063_v1 = vld [vmem:[%s411_s19 + $0x8] sm:$0xff]  ;;  %s1621_s19 = sshll.u32 %s2029_s25, 8  ;;  %s1940_s0 = smov [#allocation2]  }
  0x1c   : > { %v418_v2 = vsel %vm417_vm0, %v2061_v0, 0.0  ;;  %v421_v3 = vsel %vm417_vm0, %v2063_v1, 0.0  ;;  %s1870_s18 = sshll.u32 %s1940_s0, 4  ;;  %s1871_s18 = int_to_ptr.vmem [resolvable:$false] %s1870_s18 }
  0x1d   : > { %419 = vadd.xlane.f32.xlu0 %v418_v2  ;;  %1676 = vmatpush3.bf16.msra.mxu0 %v1785_v18 }
  0x21   : > { %422 = vadd.xlane.f32.xlu0 %v421_v3 }
  0xaa   : > { %v420_v4 = vpop.xlane.xlu0 %419 }
  0xab   : > { %v425_v5 = vmul.f32 0.015625, %v420_v4 }
  0xad   : > { %v427_v6 = vsub.f32 %v2061_v0, %v425_v5 }
  0xae   : > { %v423_v7 = vpop.xlane.xlu0 %422 }
  0xaf   : > { %v426_v8 = vmul.f32 0.015625, %v423_v7  ;;  %v429_v9 = vmul.f32 %v427_v6, %v427_v6 }
  0xb1   : > { %v428_v10 = vsub.f32 %v2063_v1, %v426_v8  ;;  %v431_v11 = vsel %vm417_vm0, %v429_v9, 0.0 }
  0xb2   : > { %432 = vadd.xlane.f32.xlu1 %v431_v11 }
  0xb3   : > { %v430_v12 = vmul.f32 %v428_v10, %v428_v10 }
  0xb5   : > { %v434_v13 = vsel %vm417_vm0, %v430_v12, 0.0 }
  0xb6   : > { %435 = vadd.xlane.f32.xlu1 %v434_v13 }
 0x13f   : > { %v433_v19 = vpop.xlane.xlu1 %432 }
 0x140   : > { %v437_v20 = vmul.f32 0.015625, %v433_v19 }
 0x142   : > { %v439_v21 = vadd.f32 1e-05, %v437_v20 }
 0x143   : > { %v436_v22 = vpop.xlane.xlu1 %435 }
 0x144   : > { %1818 = vrsqrt.f32 %v439_v21  ;;  %v438_v23 = vmul.f32 0.015625, %v436_v22 }
 0x146   : > { %v440_v24 = vadd.f32 1e-05, %v438_v23 }
 0x148   : > { %1820 = vrsqrt.f32 %v440_v24  ;;  %v1786_v24 = vld [vmem:[%s2353_s4 + $0x8] sm:$0xff]  }
 0x14e   : > { %v1819_v25 = vpop.eup %1818 }
 0x14f   : > { %v443_v26 = vmul.f32 %v1819_v25, %v427_v6 }
 0x151   : > { %v451_v30 = vmul.f32 %v1563_v27, %v443_v26  ;;  %v1787_v26 = vld [vmem:[%s2353_s4] sm:$0xff]  }
 0x152   : > { %v1821_v28 = vpop.eup %1820 }
 0x153   : > { %v444_v29 = vmul.f32 %v1821_v28, %v428_v10  ;;  %v459_v33 = vadd.f32 %v1564_v31, %v451_v30 }
 0x155   : > { %v452_v32 = vmul.f32 %v1563_v27, %v444_v29 }
 0x157   : > { %v460_v34 = vadd.f32 %v1564_v31, %v452_v32 }
 0x159   : > { %v461_v35 = vpack.c.bf16 %v460_v34, %v459_v33 }
 0x15b   : > { %1678 = vmatmul.mubr.msk.bf16.vlgmr.msra.gmra.mrb[0].mxu0 %vm417_vm0, %v461_v35 }
 0x22e   : > { %v531_v36 = vpop.f32.mrb[0].mxu0 }
 0x22f   : > { %v1679_v37 = vpop.f32.mrb[1].mxu0 }
 0x230   : > { %v534_v38 = vpop.f32.mrb[2].mxu0 }
 0x231   : > { %v2098_v39 = vpack.c.bf16 %v534_v38, %v531_v36  ;;  %v1680_v40 = vpop.f32.mrb[3].mxu0 }
 0x233   : > { %557 = vrot.lane.b32.xlu1 %v2098_v39, %s1932_s29  ;;  %559 = vrot.lane.b32.xlu0 %v2098_v39, %s1933_s15  ;;  %s1938_s29 = smov 16   ;;  %s2301_s15 = scalar_lea.hbm %s2361_s12, %s1621_s19 }
 0x234   : > { %1683 = vmatprep.mubr.msk.bf16.mxu0 %vm561_vm2, %v2098_v39  ;;  %s1872_s19 = scalar_lea.vmem %s1871_s18, 512 }
 0x2a5   : > { %v560_v41 = vpop.permute.xlu0 %559  ;;  %v2107_v43 = vpop.permute.xlu1 %557 }
 0x2a6   : > { %v569_v42 = vsel %vm561_vm2, %v560_v41, 0  ;;  %1729 = vmatprep.subr.msk.bf16.mxu0 %vm561_vm2, %v560_v41 }
 0x2a7   : > { %1682 = vmatpush3.bf16.xpose.msra.mxu0 %v569_v42 }
 0x2a8   : > { %1693 = vmatprep.subr.bf16.mxu0 %v1930_v15 }
 0x2ae   : > { %1684 = vmatmul.mubr.msk.bf16.vlgmr.msra.gmra.mrb[4].mxu0 %vm561_vm2, %v2107_v43 }
 0x2af   : > { %1695 = vmatprep.mubr.msk.bf16.mxu0 %vm1931_vm1, %v1930_v15  ;;  %1694 = vmatpush3.bf16.msra.mxu0 %v1786_v24 }
 0x381   : > { %v1685_v50 = vpop.f32.mrb[4].mxu0 }
 0x382   : > { %v614_v51 = vadd.f32 %v1685_v50, %v2117_v49  ;;  %v605_v52 = vpop.f32.mrb[5].mxu0 }
 0x383   : > { %v606_v54 = vadd.f32 %v605_v52, %v2117_v49  ;;  %v1686_v55 = vpop.f32.mrb[6].mxu0 }
 0x384   : > { %v608_v56 = vpop.f32.mrb[7].mxu0  ;;  %v626_v57 = vsel %vm561_vm2, %v614_v51, -inf  ;;  %v617_v58 = vadd.f32 %v1686_v55, %v2120_v53 }
 0x385   : > { %v609_v59 = vadd.f32 %v608_v56, %v2120_v53  ;;  %627 = vmax.xlane.f32.xlu0 %v626_v57  ;;  %v620_v60 = vsel %vm561_vm2, %v606_v54, -inf }
 0x386   : > { %621 = vmax.xlane.f32.xlu1 %v620_v60  ;;  %v629_v62 = vsel %vm561_vm2, %v617_v58, -inf }
 0x387   : > { %v623_v61 = vsel %vm561_vm2, %v609_v59, -inf }
 0x389   : > { %624 = vmax.xlane.f32.xlu0 %v623_v61 }
 0x38a   : > { %630 = vmax.xlane.f32.xlu1 %v629_v62 }
 0x39f   : > { %658 = vrot.lane.b32.xlu0 %v2098_v39, %s1935_s16  ;;  %s404_s16 = sand.u32 1, %s1920_s22  }
 0x3a0   : > { %s2308_s25 = scalar_lea.sflag [#allocation3], %s404_s16 }
 0x3a3   : > { %826 = vrot.lane.b32.xlu0 %v2098_v39, %s1936_s17 }
 0x412   : > { %v628_v63 = vpop.xlane.xlu0 %627 }
 0x413   : > { %v634_v2 = vsub.f32 %v614_v51, %v628_v63  ;;  %v622_v3 = vpop.xlane.xlu1 %621 }
 0x414   : > { %v632_v4 = vsub.f32 %v606_v54, %v622_v3 }
 0x415   : > { %v640_v5 = vmul.f32 1.442695, %v634_v2 }
 0x416   : > { %v636_v6 = vmul.f32 1.442695, %v632_v4  ;;  %v625_v7 = vpop.xlane.xlu0 %624 }
 0x417   : > { %1822 = vpow2.f32 %v640_v5  ;;  %v633_v8 = vsub.f32 %v609_v59, %v625_v7  ;;  %v631_v9 = vpop.xlane.xlu1 %630 }
 0x418   : > { %1824 = vpow2.f32 %v636_v6  ;;  %v635_v10 = vsub.f32 %v617_v58, %v631_v9 }
 0x419   : > { %v638_v11 = vmul.f32 1.442695, %v633_v8 }
 0x41a   : > { %v642_v12 = vmul.f32 1.442695, %v635_v10  ;;  %v659_v13 = vpop.permute.xlu0 %658 }
 0x41b   : > { %1826 = vpow2.f32 %v638_v11  ;;  %1687 = vmatprep.subr.bf16.mxu1 %v659_v13 }
 0x41c   : > { %1828 = vpow2.f32 %v642_v12  ;;  %1688 = vmatpush3.bf16.msra.mxu1 %v659_v13 }
 0x41d   : > { %1699 = vmatprep.subr.bf16.mxu1 %v1930_v15 }
 0x41e   : > { %v827_v30 = vpop.permute.xlu0 %826 }
 0x421   : > { %v1823_v14 = vpop.eup %1822 }
 0x422   : > { %v1825_v16 = vpop.eup %1824  ;;  %v650_v17 = vsel %vm561_vm2, %v1823_v14, 0.0 }
 0x423   : > { %651 = vadd.xlane.f32.xlu1 %v650_v17  ;;  %v644_v18 = vsel %vm561_vm2, %v1825_v16, 0.0 }
 0x424   : > { %645 = vadd.xlane.f32.xlu0 %v644_v18 }
 0x425   : > { %v1827_v19 = vpop.eup %1826 }
 0x426   : > { %v1829_v20 = vpop.eup %1828  ;;  %v656_v21 = vpack.c.bf16 %v1827_v19, %v1825_v16  ;;  %v647_v25 = vsel %vm561_vm2, %v1827_v19, 0.0 }
 0x427   : > { %v653_v22 = vsel %vm561_vm2, %v1829_v20, 0.0  ;;  %v657_v23 = vpack.c.bf16 %v1829_v20, %v1823_v14 }
 0x428   : > { %1689 = vmatprep.mubr.msk.bf16.mxu1 %vm561_vm2, %v656_v21  ;;  %654 = vadd.xlane.f32.xlu1 %v653_v22 }
 0x429   : > { %1690 = vmatmul.mubr.msk.bf16.vlgmr.msra.gmra.mrb[0].mxu1 %vm561_vm2, %v657_v23 }
 0x42a   : > { %1701 = vmatprep.mubr.msk.bf16.mxu1 %vm1931_vm1, %v1930_v15  ;;  %1700 = vmatpush3.bf16.msra.mxu1 %v1787_v26 }
 0x439   : > { %830 = vrot.lane.b32.xlu1 %v2098_v39, %s1937_s20 }
 0x43d   : > { %828 = vrot.lane.b32.xlu1 %v2107_v43, %s1936_s17  ;;  %s1560_s17 = sshll.u32 %s404_s16, 4 }
 0x43e   : > { %s406_s20 = scalar_lea.vmem [#allocation2], %s1560_s17 }
 0x43f   : > { %s1494_s26 = sshll.u32 %s406_s20, 4  ;;  %s2303_s26 = int_to_ptr.vmem [resolvable:$true] %s1494_s26 }
 0x440   : > { %s1866_s17 = scalar_lea.vmem %s2303_s26, 256  ;;  %p1873_p0 = scmp.lt.s32.totalorder %s2303_s26, %s1871_s18 }
 0x441   : > { %p1867_p11 = scmp.ne.s32.totalorder %s2303_s26, %s1866_s17  ;;  %p1874_p1 = scmp.lt.s32.totalorder %s1872_s19, %s1866_s17 }
 0x443   : > { %p1868_p12 = pnand %p1867_p11, %p2046_p5  ;;  %p1875_p2 = por %p1874_p1, %p1873_p0 }
 0x445   : > { %p1869_p13 = pneg %p1868_p12 }
 0x447   : > { %p1876_p3 = pnand %p1875_p2, %p1869_p13 }
 0x461   : > { %648 = vadd.xlane.f32.xlu1 %v647_v25 }
 0x4b0   : > { %v652_v27 = vpop.xlane.xlu1 %651 }
 0x4b1   : > { %v646_v32 = vpop.xlane.xlu0 %645  ;;  %1830 = vrcp.f32 %v652_v27 }
 0x4b2   : > { %1832 = vrcp.f32 %v646_v32 }
 0x4b5   : > { %v655_v28 = vpop.xlane.xlu1 %654 }
 0x4b6   : > { %1834 = vrcp.f32 %v655_v28 }
 0x4b9   : > { %v831_v29 = vpop.permute.xlu1 %830 }
 0x4ba   : > { %1730 = vmatprep.subr.msk.bf16.mxu0 %vm561_vm2, %v831_v29  ;;  %v839_v51 = vsel %vm561_vm2, %v831_v29, 0 }
 0x4bb   : > { %v1831_v34 = vpop.eup %1830 }
 0x4bc   : > { %v1833_v36 = vpop.eup %1832 }
 0x4bd   : > { %v829_v31 = vpop.permute.xlu1 %828 }
 0x4c0   : > { %v1835_v40 = vpop.eup %1834 }
 0x4ee   : > { %v649_v33 = vpop.xlane.xlu1 %648 }
 0x4ef   : > { %1836 = vrcp.f32 %v649_v33 }
 0x4f9   : > { %v1837_v42 = vpop.eup %1836 }
 0x4fc   : > { %v1691_v35 = vpop.f32.mrb[0].mxu1 }
 0x4fd   : > { %v722_v37 = vmul.f32 %v1831_v34, %v1691_v35  ;;  %v701_v38 = vpop.f32.mrb[1].mxu1  ;;  %v1788_v34 = vld [vmem:[%s2353_s4 + $0x10] sm:$0xff]   ;;  %v1789_v35 = vld [vmem:[%s2353_s4 + $0x18] sm:$0xff]  }
 0x4fe   : > { %v1692_v41 = vpop.f32.mrb[2].mxu1  ;;  %v720_v46 = vmul.f32 %v1833_v36, %v701_v38 }
 0x4ff   : > { %v723_v43 = vmul.f32 %v1835_v40, %v1692_v41  ;;  %v704_v44 = vpop.f32.mrb[3].mxu1 }
 0x500   : > { %v721_v47 = vmul.f32 %v1837_v42, %v704_v44 }
 0x501   : > { %v725_v48 = vpack.c.bf16 %v723_v43, %v722_v37 }
 0x502   : > { %v724_v50 = vpack.c.bf16 %v721_v47, %v720_v46 }
 0x503   : > { %1696 = vmatmul.mubr.msk.bf16.vlgmr.msra.gmra.mrb[8].mxu0 %vm561_vm2, %v725_v48 }
 0x504   : > { %1706 = vmatpush3.bf16.xpose.msra.mxu0 %v839_v51  ;;  %1702 = vmatmul.mubr.msk.bf16.vlgmr.msra.gmra.mrb[4].mxu1 %vm561_vm2, %v724_v50 }
 0x505   : > { %1707 = vmatprep.mubr.msk.bf16.mxu0 %vm561_vm2, %v827_v30  ;;  %1717 = vmatprep.subr.bf16.mxu0 %v1930_v15 }
 0x50b   : > { %1708 = vmatmul.mubr.msk.bf16.vlgmr.msra.gmra.mrb[12].mxu0 %vm561_vm2, %v829_v31 }
 0x50c   : > { %1719 = vmatprep.mubr.msk.bf16.mxu0 %vm1931_vm1, %v1930_v15  ;;  %1718 = vmatpush3.bf16.msra.mxu0 %v1788_v34 }
 0x5d6   : > { %v769_v52 = vpop.f32.mrb[8].mxu0 }
 0x5d7   : > { %v1697_v54 = vpop.f32.mrb[9].mxu0  ;;  %v819_v55 = vpop.f32.mrb[4].mxu1 }
 0x5d8   : > { %v2159_v56 = vadd.f32 %v819_v55, %v769_v52  ;;  %v772_v57 = vpop.f32.mrb[10].mxu0  ;;  %v1703_v58 = vpop.f32.mrb[5].mxu1 }
 0x5d9   : > { %v1698_v59 = vpop.f32.mrb[11].mxu0  ;;  %v822_v60 = vpop.f32.mrb[6].mxu1 }
 0x5da   : > { %v2161_v61 = vadd.f32 %v822_v60, %v772_v57  ;;  %v1704_v62 = vpop.f32.mrb[7].mxu1 }
 0x5de   : > { %v1709_v63 = vpop.f32.mrb[12].mxu0 }
 0x5df   : > { %v884_v2 = vadd.f32 %v1709_v63, %v2117_v49  ;;  %v875_v3 = vpop.f32.mrb[13].mxu0 }
 0x5e0   : > { %v1710_v4 = vpop.f32.mrb[14].mxu0  ;;  %v876_v5 = vadd.f32 %v875_v3, %v2117_v49 }
 0x5e1   : > { %v887_v6 = vadd.f32 %v1710_v4, %v2120_v53  ;;  %v878_v7 = vpop.f32.mrb[15].mxu0  ;;  %v896_v8 = vsel %vm561_vm2, %v884_v2, -inf }
 0x5e2   : > { %897 = vmax.xlane.f32.xlu0 %v896_v8  ;;  %v879_v10 = vadd.f32 %v878_v7, %v2120_v53  ;;  %v890_v11 = vsel %vm561_vm2, %v876_v5, -inf  ;;  %v1586_v8 = vld [vmem:[%s2354_s5] ss:$0 sm:$0xff] }
 0x5e3   : > { %v899_v9 = vsel %vm561_vm2, %v887_v6, -inf }
 0x5e4   : > { %900 = vmax.xlane.f32.xlu1 %v899_v9  ;;  %v893_v12 = vsel %vm561_vm2, %v879_v10, -inf }
 0x5e6   : > { %891 = vmax.xlane.f32.xlu0 %v890_v11 }
 0x5ea   : > { %894 = vmax.xlane.f32.xlu0 %v893_v12 }
 0x600   : > { %928 = vrot.lane.b32.xlu0 %v2098_v39, %s1938_s29 }
 0x66f   : > { %v898_v49 = vpop.xlane.xlu0 %897 }
 0x670   : > { %v904_v13 = vsub.f32 %v884_v2, %v898_v49 }
 0x671   : > { %v901_v14 = vpop.xlane.xlu1 %900 }
 0x672   : > { %v910_v16 = vmul.f32 1.442695, %v904_v13  ;;  %v905_v17 = vsub.f32 %v887_v6, %v901_v14 }
 0x673   : > { %v892_v18 = vpop.xlane.xlu0 %891 }
 0x674   : > { %1838 = vpow2.f32 %v910_v16  ;;  %v902_v19 = vsub.f32 %v876_v5, %v892_v18  ;;  %v912_v21 = vmul.f32 1.442695, %v905_v17 }
 0x676   : > { %v906_v20 = vmul.f32 1.442695, %v902_v19 }
 0x677   : > { %v895_v53 = vpop.xlane.xlu0 %894 }
 0x678   : > { %1840 = vpow2.f32 %v906_v20  ;;  %v903_v22 = vsub.f32 %v879_v10, %v895_v53  ;;  %v1792_v53 = vld [vmem:[%s2357_s8 + $0x4] ss:$8 sps:$4 sm:$0xff]  }
 0x679   : > { %1842 = vpow2.f32 %v912_v21  ;;  %1219 = vmatprep.subr.bf16.mxu0 %v1792_v53 }
 0x67a   : > { %v908_v23 = vmul.f32 1.442695, %v903_v22  ;;  %v1790_v22 = vld [vmem:[%s2357_s8] ss:$8 sps:$4 sm:$0xff]  }
 0x67b   : > { %v929_v24 = vpop.permute.xlu0 %928 }
 0x67c   : > { %1844 = vpow2.f32 %v908_v23  ;;  %1711 = vmatprep.subr.bf16.mxu1 %v929_v24  ;;  %v1795_v23 = vld [vmem:[%s2357_s8 + $0x14] ss:$8 sps:$4 sm:$0xff]  }
 0x67d   : > { %1712 = vmatpush3.bf16.msra.mxu1 %v929_v24  ;;  %v1793_v24 = vld [vmem:[%s2357_s8 + $0x10] ss:$8 sps:$4 sm:$0xff]  }
 0x67e   : > { %v1839_v39 = vpop.eup %1838  ;;  %1723 = vmatprep.subr.bf16.mxu1 %v1930_v15 }
 0x67f   : > { %v920_v25 = vsel %vm561_vm2, %v1839_v39, 0.0 }
 0x680   : > { %921 = vadd.xlane.f32.xlu1 %v920_v25  ;;  %v1796_v25 = vld [vmem:[%s2357_s8 + $0x20] ss:$8 sps:$4 sm:$0xff]  }
 0x682   : > { %v1841_v26 = vpop.eup %1840 }
 0x683   : > { %v914_v27 = vsel %vm561_vm2, %v1841_v26, 0.0  ;;  %v1843_v28 = vpop.eup %1842 }
 0x684   : > { %915 = vadd.xlane.f32.xlu1 %v914_v27  ;;  %v927_v32 = vpack.c.bf16 %v1843_v28, %v1839_v39  ;;  %v923_v33 = vsel %vm561_vm2, %v1843_v28, 0.0  ;;  %v1798_v39 = vld [vmem:[%s2357_s8 + $0x24] ss:$8 sps:$4 sm:$0xff]   ;;  %v1801_v27 = vld [vmem:[%s2357_s8 + $0x34] ss:$8 sps:$4 sm:$0xff]   ;;  %v1939_v28 = vmov 0  }
 0x686   : > { %v1845_v29 = vpop.eup %1844 }
 0x687   : > { %v917_v30 = vsel %vm561_vm2, %v1845_v29, 0.0  ;;  %v926_v31 = vpack.c.bf16 %v1845_v29, %v1841_v26  ;;  %v1799_v26 = vld [vmem:[%s2357_s8 + $0x30] ss:$8 sps:$4 sm:$0xff]  }
 0x688   : > { %918 = vadd.xlane.f32.xlu1 %v917_v30 }
 0x689   : > { %1713 = vmatprep.mubr.msk.bf16.mxu1 %vm561_vm2, %v926_v31 }
 0x68a   : > { %1714 = vmatmul.mubr.msk.bf16.vlgmr.msra.gmra.mrb[8].mxu1 %vm561_vm2, %v927_v32 }
 0x68b   : > { %1725 = vmatprep.mubr.msk.bf16.mxu1 %vm1931_vm1, %v1930_v15  ;;  %1724 = vmatpush3.bf16.msra.mxu1 %v1789_v35 }
 0x68c   : > { %924 = vadd.xlane.f32.xlu1 %v923_v33 }
 0x70d   : > { %v922_v36 = vpop.xlane.xlu1 %921 }
 0x70e   : > { %1846 = vrcp.f32 %v922_v36 }
 0x711   : > { %v916_v37 = vpop.xlane.xlu1 %915 }
 0x712   : > { %1848 = vrcp.f32 %v916_v37  ;;  %v1587_v37 = vld [vmem:[%s2355_s6] ss:$0 sm:$0xff] }
 0x715   : > { %v919_v38 = vpop.xlane.xlu1 %918 }
 0x718   : > { %v1847_v15 = vpop.eup %1846 }
 0x719   : > { %v925_v40 = vpop.xlane.xlu1 %924 }
 0x71a   : > { %1850 = vrcp.f32 %v925_v40 }
 0x71b   : > { %1852 = vrcp.f32 %v919_v38 }
 0x71c   : > { %v1849_v42 = vpop.eup %1848 }
 0x724   : > { %v1851_v44 = vpop.eup %1850 }
 0x725   : > { %v1853_v47 = vpop.eup %1852 }
 0x75d   : > { %v1715_v41 = vpop.f32.mrb[8].mxu1 }
 0x75e   : > { %v971_v43 = vpop.f32.mrb[9].mxu1  ;;  %v992_v48 = vmul.f32 %v1847_v15, %v1715_v41  ;;  %v1588_v41 = vld [vmem:[%s2356_s7] ss:$0 sm:$0xff] }
 0x75f   : > { %v1716_v46 = vpop.f32.mrb[10].mxu1  ;;  %v990_v52 = vmul.f32 %v1849_v42, %v971_v43 }
 0x760   : > { %v993_v50 = vmul.f32 %v1851_v44, %v1716_v46  ;;  %v974_v51 = vpop.f32.mrb[11].mxu1 }
 0x761   : > { %v991_v54 = vmul.f32 %v1853_v47, %v974_v51  ;;  %v1802_v47 = vld [vmem:[%s2359_s10 + $0x40] sm:$0xff]   ;;  %v1805_v51 = vld [vmem:[%s2359_s10 + $0x8] sm:$0xff]  }
 0x762   : > { %v1047_v55 = vpack.c.bf16 %v993_v50, %v992_v48  ;;  %v1803_v48 = vld [vmem:[%s2359_s10] sm:$0xff]   ;;  %1647 = vmatprep.subr.bf16.mxu1 %v1802_v47  ;;  %v1804_v50 = vld [vmem:[%s2359_s10 + $0x48] sm:$0xff]  }
 0x763   : > { %v994_v57 = vpack.c.bf16 %v991_v54, %v990_v52  ;;  %v1806_v52 = vld [vmem:[%s2359_s10 + $0x50] sm:$0xff]  }
 0x764   : > { %1726 = vmatmul.mubr.msk.bf16.vlgmr.msra.gmra.mrb[12].mxu1 %vm561_vm2, %v1047_v55  ;;  %v1807_v54 = vld [vmem:[%s2359_s10 + $0x10] sm:$0xff]   ;;  %v1808_v55 = vld [vmem:[%s2359_s10 + $0x58] sm:$0xff]  }
 0x765   : > { %1720 = vmatmul.mubr.msk.bf16.vlgmr.msra.gmra.mrb[16].mxu0 %vm561_vm2, %v994_v57  ;;  %1648 = vmatpush3.bf16.msra.mxu1 %v1803_v48  ;;  %v1809_v57 = vld [vmem:[%s2359_s10 + $0x18] sm:$0xff]  }
 0x766   : > { %1220 = vmatpush1.bf16.msra.mxu0 %v1790_v22  ;;  %1251 = vmatprep.mubr.bf16.mxu0 %v1939_v28 }
 0x767   : > { %1221 = vmatprep.subr.bf16.mxu0 %v1795_v23  ;;  %1649 = vmatprep.subr.bf16.mxu1 %v1804_v50 }
 0x769   : > { %1650 = vmatpush3.bf16.msra.mxu1 %v1805_v51 }
 0x76a   : > { %1222 = vmatpush1.bf16.msra.mxu0 %v1793_v24  ;;  %1651 = vmatprep.subr.bf16.mxu1 %v1806_v52 }
 0x76b   : > { %1223 = vmatprep.subr.bf16.mxu0 %v1798_v39 }
 0x76d   : > { %1652 = vmatpush3.bf16.msra.mxu1 %v1807_v54 }
 0x76e   : > { %1224 = vmatpush1.bf16.msra.mxu0 %v1796_v25  ;;  %1653 = vmatprep.subr.bf16.mxu1 %v1808_v55  ;;  %v1598_v55 = vld [vmem:[%s2360_s11] ss:$0 sm:$0xff] }
 0x76f   : > { %1225 = vmatprep.subr.bf16.mxu0 %v1801_v27 }
 0x771   : > { %1654 = vmatpush3.bf16.msra.mxu1 %v1809_v57 }
 0x772   : > { %1226 = vmatpush1.bf16.msra.mxu0 %v1799_v26 }
 0x837   : > { %v1091_v58 = vpop.f32.mrb[12].mxu1 }
 0x838   : > { %v1038_v59 = vpop.f32.mrb[16].mxu0  ;;  %v1727_v60 = vpop.f32.mrb[13].mxu1 }
 0x839   : > { %v1045_v62 = vadd.f32 %v1038_v59, %v2159_v56  ;;  %v1721_v63 = vpop.f32.mrb[17].mxu0  ;;  %v1094_v2 = vpop.f32.mrb[14].mxu1  ;;  %v1811_v59 = vld [vmem:[%s2359_s10 + $0x20] sm:$0xff]   ;;  %v1812_v60 = vld [vmem:[%s2359_s10 + $0x68] sm:$0xff]  }
 0x83a   : > { %v1041_v3 = vpop.f32.mrb[18].mxu0  ;;  %v1728_v4 = vpop.f32.mrb[15].mxu1  ;;  %v1814_v63 = vld [vmem:[%s2359_s10 + $0x70] sm:$0xff]  }
 0x83b   : > { %v1098_v5 = vadd.f32 %v1091_v58, %v1045_v62  ;;  %v1046_v6 = vadd.f32 %v1041_v3, %v2161_v61  ;;  %v1722_v7 = vpop.f32.mrb[19].mxu0  ;;  %v1810_v58 = vld [vmem:[%s2359_s10 + $0x60] sm:$0xff]   ;;  %v1813_v62 = vld [vmem:[%s2359_s10 + $0x28] sm:$0xff]   ;;  %v1816_v3 = vld [vmem:[%s2359_s10 + $0x78] sm:$0xff]  }
 0x83c   : > { %1655 = vmatprep.subr.bf16.mxu1 %v1810_v58  ;;  %v1817_v4 = vld [vmem:[%s2359_s10 + $0x38] sm:$0xff]   ;;  %v1172_v7 = vsub.s32 1, %v2113_v45 }
 0x83d   : > { %v1100_v9 = vadd.f32 %v1098_v5, %v2061_v0  ;;  %v1099_v10 = vadd.f32 %v1094_v2, %v1046_v6  ;;  %1656 = vmatpush3.bf16.msra.mxu1 %v1811_v59  ;;  %v1815_v2 = vld [vmem:[%s2359_s10 + $0x30] sm:$0xff]   ;;  %v1168_v5 = vsub.s32 0, %v2113_v45  ;;  %v1164_v6 = vld [vmem:[%s2358_s9] sm:$0x3] }
 0x83e   : > { %1657 = vmatprep.subr.bf16.mxu1 %v1812_v60 }
 0x83f   : > { %v1101_v11 = vadd.f32 %v1099_v10, %v2063_v1  ;;  %v2196_v12 = vadd.f32 %v1586_v8, %v1100_v9  ;;  %v1173_v9 = vrot.slane %v1164_v6, %v1172_v7 }
 0x841   : > { %v1113_v56 = vsel %vm417_vm0, %v2196_v12, 0.0  ;;  %v2200_v49 = vadd.f32 %v1586_v8, %v1101_v11  ;;  %1658 = vmatpush3.bf16.msra.mxu1 %v1813_v62  ;;  %v1169_v8 = vrot.slane %v1164_v6, %v1168_v5 }
 0x842   : > { %1114 = vadd.xlane.f32.xlu1 %v1113_v56  ;;  %1659 = vmatprep.subr.bf16.mxu1 %v1814_v63 }
 0x843   : > { %v1116_v61 = vsel %vm417_vm0, %v2200_v49, 0.0 }
 0x845   : > { %1660 = vmatpush3.bf16.msra.mxu1 %v1815_v2 }
 0x846   : > { %1117 = vadd.xlane.f32.xlu1 %v1116_v61  ;;  %1661 = vmatprep.subr.bf16.mxu1 %v1816_v3 }
 0x849   : > { %1662 = vmatpush3.bf16.msra.mxu1 %v1817_v4 }
 0x8cf   : > { %v1115_v13 = vpop.xlane.xlu1 %1114 }
 0x8d0   : > { %v1119_v14 = vmul.f32 0.015625, %v1115_v13 }
 0x8d2   : > { %v1121_v16 = vsub.f32 %v2196_v12, %v1119_v14 }
 0x8d3   : > { %v1118_v0 = vpop.xlane.xlu1 %1117 }
 0x8d4   : > { %v1120_v17 = vmul.f32 0.015625, %v1118_v0  ;;  %v1123_v18 = vmul.f32 %v1121_v16, %v1121_v16 }
 0x8d6   : > { %v1122_v1 = vsub.f32 %v2200_v49, %v1120_v17  ;;  %v1125_v19 = vsel %vm417_vm0, %v1123_v18, 0.0 }
 0x8d7   : > { %1126 = vadd.xlane.f32.xlu0 %v1125_v19 }
 0x8d8   : > { %v1124_v20 = vmul.f32 %v1122_v1, %v1122_v1 }
 0x8da   : > { %v1128_v21 = vsel %vm417_vm0, %v1124_v20, 0.0 }
 0x8db   : > { %1129 = vadd.xlane.f32.xlu1 %v1128_v21 }
 0x964   : > { %v1127_v29 = vpop.xlane.xlu0 %1126 }
 0x965   : > { %v1131_v30 = vmul.f32 0.015625, %v1127_v29 }
 0x967   : > { %v1133_v31 = vadd.f32 1e-05, %v1131_v30 }
 0x968   : > { %v1130_v32 = vpop.xlane.xlu1 %1129 }
 0x969   : > { %1854 = vrsqrt.f32 %v1133_v31  ;;  %v1132_v33 = vmul.f32 0.015625, %v1130_v32 }
 0x96b   : > { %v1134_v34 = vadd.f32 1e-05, %v1132_v33 }
 0x96d   : > { %1856 = vrsqrt.f32 %v1134_v34 }
 0x973   : > { %v1855_v35 = vpop.eup %1854 }
 0x974   : > { %v1137_v36 = vmul.f32 %v1855_v35, %v1121_v16 }
 0x976   : > { %v1145_v40 = vmul.f32 %v1587_v37, %v1137_v36 }
 0x977   : > { %v1857_v38 = vpop.eup %1856 }
 0x978   : > { %v1138_v15 = vmul.f32 %v1857_v38, %v1122_v1  ;;  %v1153_v43 = vadd.f32 %v1588_v41, %v1145_v40 }
 0x97a   : > { %v1146_v42 = vmul.f32 %v1587_v37, %v1138_v15 }
 0x97c   : > { %v1154_v44 = vadd.f32 %v1588_v41, %v1146_v42 }
 0x97e   : > { %v1155_v46 = vpack.c.bf16 %v1154_v44, %v1153_v43 }
 0x980   : > { %1597 = vmatmul.mubr.msk.bf16.vlgmr.msra.gmra.mrb[20].mxu0 %vm417_vm0, %v1155_v46 }
 0xa53   : > { %v1253_v10 = vpop.f32.mrb[20].mxu0 }
 0xa54   : > { %v1254_v11 = vadd.f32 %v1253_v10, %v1169_v8  ;;  %v1255_v56 = vpop.f32.mrb[21].mxu0 }
 0xa55   : > { %v1256_v61 = vadd.f32 %v1255_v56, %v1173_v9  ;;  %v1257_v13 = vpop.f32.mrb[22].mxu0 }
 0xa56   : > { %v1266_v14 = vmul.f32 0.044715, %v1254_v11  ;;  %v1258_v16 = vadd.f32 %v1257_v13, %v1169_v8  ;;  %v1259_v0 = vpop.f32.mrb[23].mxu0  ;;  %v1262_v40 = vmul.f32 0.5, %v1254_v11 }
 0xa57   : > { %v1267_v17 = vmul.f32 0.044715, %v1256_v61  ;;  %v1260_v18 = vadd.f32 %v1259_v0, %v1173_v9  ;;  %v1263_v42 = vmul.f32 0.5, %v1256_v61 }
 0xa58   : > { %v1270_v1 = vmul.f32 %v1266_v14, %v1254_v11  ;;  %v1268_v19 = vmul.f32 0.044715, %v1258_v16  ;;  %v1264_v15 = vmul.f32 0.5, %v1258_v16 }
 0xa59   : > { %v1271_v20 = vmul.f32 %v1267_v17, %v1256_v61  ;;  %v1269_v21 = vmul.f32 0.044715, %v1260_v18  ;;  %v1265_v43 = vmul.f32 0.5, %v1260_v18 }
 0xa5a   : > { %v1274_v53 = vmul.f32 %v1270_v1, %v1254_v11  ;;  %v1272_v22 = vmul.f32 %v1268_v19, %v1258_v16 }
 0xa5b   : > { %v1275_v23 = vmul.f32 %v1271_v20, %v1256_v61  ;;  %v1273_v45 = vmul.f32 %v1269_v21, %v1260_v18 }
 0xa5c   : > { %v1278_v24 = vadd.f32 %v1274_v53, %v1254_v11  ;;  %v1276_v39 = vmul.f32 %v1272_v22, %v1258_v16 }
 0xa5d   : > { %v1277_v25 = vmul.f32 %v1273_v45, %v1260_v18  ;;  %v1279_v26 = vadd.f32 %v1275_v23, %v1256_v61 }
 0xa5e   : > { %v1282_v27 = vmul.f32 0.7978846, %v1278_v24  ;;  %v1280_v28 = vadd.f32 %v1276_v39, %v1258_v16 }
 0xa5f   : > { %v1281_v29 = vadd.f32 %v1277_v25, %v1260_v18  ;;  %v1283_v30 = vmul.f32 0.7978846, %v1279_v26 }
 0xa60   : > { %1858 = vtanh.f32 %v1282_v27  ;;  %v1284_v31 = vmul.f32 0.7978846, %v1280_v28 }
 0xa61   : > { %v1285_v32 = vmul.f32 0.7978846, %v1281_v29  ;;  %1860 = vtanh.f32 %v1283_v30 }
 0xa62   : > { %1862 = vtanh.f32 %v1284_v31 }
 0xa63   : > { %1864 = vtanh.f32 %v1285_v32 }
 0xa6a   : > { %v1859_v33 = vpop.eup %1858 }
 0xa6b   : > { %v1861_v34 = vpop.eup %1860  ;;  %v1290_v35 = vadd.f32 1.0, %v1859_v33 }
 0xa6c   : > { %v1863_v36 = vpop.eup %1862  ;;  %v1291_v37 = vadd.f32 1.0, %v1861_v34 }
 0xa6d   : > { %v1865_v38 = vpop.eup %1864  ;;  %v1292_v41 = vadd.f32 1.0, %v1863_v36  ;;  %v1294_v46 = vmul.f32 %v1290_v35, %v1262_v40 }
 0xa6e   : > { %v1293_v44 = vadd.f32 1.0, %v1865_v38  ;;  %v1295_v48 = vmul.f32 %v1291_v37, %v1263_v42 }
 0xa6f   : > { %v1296_v47 = vmul.f32 %v1292_v41, %v1264_v15 }
 0xa70   : > { %v1297_v50 = vmul.f32 %v1293_v44, %v1265_v43 }
 0xa71   : > { %v1298_v51 = vpack.c.bf16 %v1296_v47, %v1294_v46 }
 0xa72   : > { %v1299_v52 = vpack.c.bf16 %v1297_v50, %v1295_v48 }
 0xa74   : > { %1467 = vmatprep.mubr.bf16.mxu1 %v1299_v52 }
 0xa75   : > { %1468 = vmatmul.mubr.bf16.vlgmr.msra.gmra.mrb[16].mxu1 %v1298_v51 }
 0xb48   : > { %v1663_v54 = vpop.f32.mrb[16].mxu1 }
 0xb49   : > { %v1664_v57 = vpop.f32.mrb[17].mxu1 }
 0xb4a   : > { %v1665_v58 = vadd.f32 %v1664_v57, %v1663_v54  ;;  %v1666_v59 = vpop.f32.mrb[18].mxu1 }
 0xb4b   : > { %v1667_v60 = vpop.f32.mrb[19].mxu1 }
 0xb4c   : > { %v1470_v62 = vadd.f32 %v1665_v58, %v1598_v55  ;;  %v1668_v63 = vadd.f32 %v1667_v60, %v1666_v59 }
 0xb4e   : > { %v1476_v2 = vadd.f32 %v1470_v62, %v2196_v12  ;;  %v1473_v3 = vadd.f32 %v1668_v63, %v1598_v55 }
 0xb50   : > { %1478 = vst.msk [vmem:[%s406_s20] sm:$0xff] %vm417_vm0, %v1476_v2  ;;  %v1477_v4 = vadd.f32 %v1473_v3, %v2200_v49 }
 0xb52   : > { %1479 = vst.msk [vmem:[%s406_s20 + $0x8] sm:$0xff] %vm417_vm0, %v1477_v4 }
 0xb53   : > { %1879 = shalt.err (!%p1876_p3)
}
 0xb54   : > { %s1880_s16 = scalar_lea.hbm %s2301_s15, 256  ;;  %s1884_s29 = scalar_lea.hbm %s2361_s12, 512 }
 0xb55   : > { %p1881_p4 = scmp.ne.s32.totalorder %s2301_s15, %s1880_s16  ;;  %p1885_p9 = scmp.lt.u32.totalorder %s2301_s15, %s2361_s12 }
 0xb56   : > { %p1886_p10 = scmp.lt.u32.totalorder %s1884_s29, %s1880_s16  ;;  %p1888_p12 = scmp.lt.u32.totalorder %s1880_s16, %s2301_s15 }
 0xb57   : > { %p1882_p7 = pnand %p1881_p4, %p2046_p5 }
 0xb58   : > { %p1887_p11 = por %p1886_p10, %p1885_p9 }
 0xb59   : > { %p1883_p8 = pneg %p1882_p7 }
 0xb5a   : > { %p1889_p13 = por %p1888_p12, %p1887_p11 }
 0xb5c   : > { %p1890_p0 = pnand %p1889_p13, %p1883_p8 }
 0xb5e   : > { %1893 = shalt.err (!%p1890_p0)
}
 0xb5f   : > { %s1941_s17 = smov 128   ;;  %s1942_s19 = smov 8  }
 0xb60   : > { %1731 = dma.vmem_to_hbm [thread:$0]  (%p2046_p5), %s2303_s26, 256, %s2301_s15, %s2308_s25, %s1941_s17, %s1941_s17, %s1942_s19  }
 0xb61 PF: > { %p1737_p1 = scmp.ge.s32.totalorder %s1928_s24, 2  ;;  %s1509_s20 = sand.u32 1, %s1916_s21  }
 0xb62   : > { %s1510_s16 = scalar_lea.sflag [#allocation3], %s1509_s20 }
 0xb63   : > { %p1734_p2 = pnand %p1737_p1, %p2050_p6 }
 0xb65   : > { %1911 = dma.done.wait (!%p1734_p2), %s1510_s16, 256  }
 0xb66   : > { %1913 = vsyncadd (!%p1734_p2), %s1510_s16, 4294967040  ;;  %p22_p3 = scmp.ge.s32.totalorder %s2033_s27, 4   ;;  %s2366_s21 = smov %s1920_s22 }
 0xb67   : > { %s2367_s22 = smov %s1924_s23  ;;  %s2368_s23 = smov %s2044_s30 }
 0xb68   : > { %s2369_s24 = smov %s2033_s27  ;;  %24 = sbr.rel (!%p22_p3) target bundleno = 5 (0x5), region = 103 }
 0xb6f   :  { %1515 = vsyncpa [#allocation3], 1 }
 0xb70   :  { %1517 = vsyncpa [#allocation3 + $0x1], 1 }

</bundles_post_ra>
